<compile_context>
chip_gen: v7x
topology: tpu7x:2x2x1
jax: 0.10.0
libtpu: 0.0.40
codegen_flags: <defaults>
</compile_context>

<pallas_src>
import functools

import jax
import jax.numpy as jnp
from jax import lax
from jax.experimental import pallas as pl
from jax.experimental.pallas import tpu as pltpu

EPS = 1e-5          # InstanceNorm2d default eps
NEG_SLOPE = 0.2     # LeakyReLU slope


def _round_up(x, m):
    return (x + m - 1) // m * m


def _vmem_capacity_bytes():
    try:
        return int(pltpu.get_tpu_info().vmem_capacity_bytes)
    except Exception:
        return 64 * 1024 * 1024   # assume the smallest (v7x per-TensorCore)


def _pick_co_tile(c_out_p):
    # Wide layers get >=2 C_out tiles (v7x has 2 TCs and their activations are
    # small); narrow layers keep a single tile so the input block is streamed once.
    if c_out_p < 128:
        return c_out_p
    for t in (256, 128, 64, 32, 16, 8):
        if t <= c_out_p // 2 and c_out_p % t == 0:
            return t
    return c_out_p


def _estimate_vmem(ci_t, co_t, G, L, P_p, c_in, ksize, out_bytes):
    c_in_pad = _round_up(c_in, ci_t)
    k_p = ksize * c_in_pad
    k_tile = ksize * ci_t
    x_blk = 2 * (G * ci_t * L * 2)          # double-buffered bf16 input block
    w_blk = 2 * (co_t * k_p * 2)            # per-C_out-tile resident weights
    o_blk = 2 * (co_t * P_p * out_bytes)    # double-buffered output block
    acc = co_t * P_p * 4                    # f32 accumulator scratch
    patch = 2 * (k_tile * P_p * 2)          # in-kernel patch tile + concat temp
    epi = 2 * (co_t * P_p * 4)              # epilogue temporaries
    return x_blk + w_blk + o_blk + acc + patch + epi


def _choose_tiles(c_in, c_out_p, G, L, P_p, ksize, out_bytes, budget):
    co_t = _pick_co_tile(c_out_p)
    ci_t = _round_up(c_in, 8)

    def est(ci, co):
        return _estimate_vmem(ci, co, G, L, P_p, c_in, ksize, out_bytes)

    while ci_t > 8 and est(ci_t, co_t) > budget:
        ci_t = max(8, _round_up(ci_t // 2, 8))
    while co_t > 8 and est(ci_t, co_t) > budget:
        cands = [t for t in range(8, co_t, 8) if c_out_p % t == 0]
        if not cands:
            break
        co_t = cands[-1]
    # TODO(synk): spatial (P) tiling with two-phase InstanceNorm if even the
    # minimum tiles exceed the budget (very large feature maps).
    return ci_t, co_t


def _make_dblock_kernel(taps, k_tile, p_pad, inv_true_p, n_ci):
    """taps: tuple of (subgrid index, flattened lane offset), static Python ints."""

    def kernel(mask_ref, x_ref, w_ref, o_ref, acc_ref):
        # x_ref:   (G, ci_tile, L)       bf16   (space-to-depth, flattened spatial)
        # w_ref:   (co_tile, K_p)        bf16   (resident across batch)
        # mask_ref:(1, P_p)              f32    (1.0 on true spatial positions)
        # o_ref:   (co_tile, P_p)        out_dtype
        # acc_ref: (co_tile, P_p)        f32 scratch
        ci = pl.program_id(2)

        if n_ci == 1:
            w_tile = w_ref[...]
        else:
            k0 = pl.multiple_of(ci * k_tile, 128)
            w_tile = w_ref[:, pl.ds(k0, k_tile)]          # (co_tile, k_tile)

        # In-kernel im2col: one lane-offset slice per kernel tap, tile-aligned
        # concat along sublanes -> (k_tile, P_p) patch matrix for this C_in tile.
        cols = [x_ref[g, :, pl.ds(off, p_pad)] for (g, off) in taps]
        patch = jnp.concatenate(cols, axis=0)

        contrib = jnp.dot(w_tile, patch, preferred_element_type=jnp.float32)

        @pl.when(ci == 0)
        def _init():                     # fold init into the first reduction step
            acc_ref[...] = contrib

        @pl.when(ci > 0)
        def _accumulate():
            acc_ref[...] += contrib

        @pl.when(ci == pl.num_programs(2) - 1)
        def _finalize():
            conv = acc_ref[...]                               # (co_tile, P_p) f32
            m = mask_ref[...]                                 # (1, P_p)
            masked = conv * m
            # Single-pass InstanceNorm stats over the true spatial positions.
            s1 = jnp.sum(masked, axis=-1, keepdims=True)
            s2 = jnp.sum(masked * conv, axis=-1, keepdims=True)
            mean = s1 * inv_true_p
            var = jnp.maximum(s2 * inv_true_p - mean * mean, 0.0)
            norm = (conv - mean) * lax.rsqrt(var + EPS)
            o_ref[...] = jnp.where(norm >= 0.0, norm, NEG_SLOPE * norm).astype(o_ref.dtype)

    return kernel


def dblock_forward(x, weight, bias, stride, compute_dtype=jnp.bfloat16, out_dtype=None):
    """x: (N, C_in, H, W) NCHW; weight: (C_out, C_in, 4, 4); bias: (C_out,)."""
    # Conv bias is cancelled exactly by the InstanceNorm mean subtraction.
    del bias
    N, C_in, H, W = x.shape
    C_out, c_in_w, kh, kw = weight.shape
    assert c_in_w == C_in
    s = int(stride)
    out_dtype = x.dtype if out_dtype is None else out_dtype
    out_bytes = jnp.dtype(out_dtype).itemsize

    # ---- spatial geometry ---------------------------------------------------
    Hp, Wp = H + 2, W + 2                          # reflect pad 1
    Ho = (Hp - kh) // s + 1
    Wo = (Wp - kw) // s + 1
    Hp2, Wp2 = _round_up(Hp, s), _round_up(Wp, s)  # make divisible by stride
    Hs, Ws = Hp2 // s, Wp2 // s                    # per-subgrid spatial extent
    a_max, b_max = (kh - 1) // s, (kw - 1) // s
    G = s * s                                      # number of stride subgrids
    W_e = max(Ws, Wo + b_max)                      # extended row width (extra cols masked)
    P_e = Ho * W_e
    P_p = _round_up(P_e, 128)                      # lane-dense output width
    max_off = a_max * W_e + b_max
    L = _round_up(max_off + P_p, 128)              # flattened lane length per subgrid
    ksize = kh * kw
    inv_true_p = 1.0 / float(Ho * Wo)

    # ---- tile sizes / VMEM budget (arch-aware: v5e/v6e 128 MiB, v7x 64 MiB) ---
    vmem_cap = _vmem_capacity_bytes()
    budget = int(vmem_cap * 0.55)
    C_out_p = _round_up(C_out, 8)
    ci_tile, co_tile = _choose_tiles(C_in, C_out_p, G, L, P_p, ksize, out_bytes, budget)
    C_in_pad = _round_up(C_in, ci_tile)
    n_ci = C_in_pad // ci_tile
    n_co = C_out_p // co_tile
    K_tile = ksize * ci_tile                       # multiple of 128 (ci_tile % 8 == 0)
    K_p = ksize * C_in_pad
    est = _estimate_vmem(ci_tile, co_tile, G, L, P_p, C_in, ksize, out_bytes)
    vmem_limit = int(min(vmem_cap * 0.85, max(est * 1.25, 32 * 1024 * 1024)))

    # ---- input: reflect pad -> space-to-depth -> flatten (no HBM im2col) ------
    xp = jnp.pad(x, ((0, 0), (0, 0), (1, 1), (1, 1)), mode="reflect")
    xp = jnp.pad(xp, ((0, 0), (0, 0), (0, Hp2 - Hp), (0, Wp2 - Wp)))
    xsd = (xp.reshape(N, C_in, Hs, s, Ws, s)
             .transpose(0, 3, 5, 1, 2, 4)
             .reshape(N, G, C_in, Hs, Ws))
    xsd = jnp.pad(xsd, ((0, 0), (0, 0), (0, C_in_pad - C_in),
                        (0, 0), (0, W_e - Ws)))
    flat = xsd.reshape(N, G, C_in_pad, Hs * W_e)
    if Hs * W_e >= L:
        x_feed = flat[..., :L]
    else:
        x_feed = jnp.pad(flat, ((0, 0), (0, 0), (0, 0), (0, L - Hs * W_e)))
    x_feed = x_feed.astype(compute_dtype)

    # ---- weights: (C_out, C_in, kh, kw) -> (C_out_p, K_p); columns grouped per
    # C_in tile and ordered (tap, ci) within the tile to match the in-kernel patch.
    w_p = jnp.pad(weight, ((0, C_out_p - C_out), (0, C_in_pad - C_in), (0, 0), (0, 0)))
    w_mat = (w_p.reshape(C_out_p, n_ci, ci_tile, kh, kw)
                .transpose(0, 1, 3, 4, 2)
                .reshape(C_out_p, K_p)
                .astype(compute_dtype))

    # ---- {0,1} mask over the padded lane dim (true spatial positions only) ----
    col = jnp.arange(P_p, dtype=jnp.int32)
    mask = ((col < Ho * W_e) & ((col % W_e) < Wo)).astype(jnp.float32).reshape(1, P_p)

    # ---- static tap table: (subgrid index, flattened lane offset) -------------
    taps = []
    for i in range(kh):
        for j in range(kw):
            taps.append(((i % s) * s + (j % s), (i // s) * W_e + (j // s)))

    kernel = _make_dblock_kernel(tuple(taps), K_tile, P_p, inv_true_p, n_ci)

    out = pl.pallas_call(
        kernel,
        out_shape=jax.ShapeDtypeStruct((N, C_out_p, P_p), out_dtype),
        grid_spec=pltpu.PrefetchScalarGridSpec(
            num_scalar_prefetch=0,
            grid=(N, n_co, n_ci),
            in_specs=[
                pl.BlockSpec((1, P_p), lambda n, co, ci: (0, 0)),
                pl.BlockSpec((pl.Squeezed(), G, ci_tile, L),
                             lambda n, co, ci: (n, 0, ci, 0)),
                pl.BlockSpec((co_tile, K_p), lambda n, co, ci: (co, 0)),
            ],
            out_specs=pl.BlockSpec((pl.Squeezed(), co_tile, P_p),
                                   lambda n, co, ci: (n, co, 0)),
            scratch_shapes=[pltpu.VMEM((co_tile, P_p), jnp.float32)],
        ),
        compiler_params=pltpu.CompilerParams(
            dimension_semantics=("parallel", "parallel", "arbitrary"),
            vmem_limit_bytes=vmem_limit,
        ),
    )(mask, x_feed, w_mat)

    # Back to NCHW: slice channel/lane padding and drop the extended columns.
    out = out[:, :C_out, :Ho * W_e].reshape(N, C_out, Ho, W_e)[..., :Wo]
    return out


def dblock_reference(x, weight, bias, stride):
    """Pure-JAX f32 reference (keeps the bias, which cancels under InstanceNorm)."""
    xp = jnp.pad(x, ((0, 0), (0, 0), (1, 1), (1, 1)), mode="reflect")
    conv = lax.conv_general_dilated(
        xp, weight, window_strides=(stride, stride), padding="VALID",
        dimension_numbers=("NCHW", "OIHW", "NCHW"))
    conv = conv + bias.reshape(1, -1, 1, 1)
    mean = jnp.mean(conv, axis=(2, 3), keepdims=True)
    var = jnp.mean((conv - mean) ** 2, axis=(2, 3), keepdims=True)
    norm = (conv - mean) * lax.rsqrt(var + EPS)
    return jnp.where(norm > 0, norm, NEG_SLOPE * norm)


def _check(key, N, C_in, H, W, C_out, stride):
    k_x, k_w, k_b = jax.random.split(key, 3)
    x = jax.random.normal(k_x, (N, C_in, H, W), dtype=jnp.float32)
    bound = 1.0 / ((C_in * 16) ** 0.5)
    w = jax.random.uniform(k_w, (C_out, C_in, 4, 4), jnp.float32, -bound, bound)
    b = jax.random.uniform(k_b, (C_out,), jnp.float32, -bound, bound)

    fwd = jax.jit(functools.partial(dblock_forward, stride=stride))
    out = jax.block_until_ready(fwd(x, w, b))
    ref = dblock_reference(x, w, b, stride)

    assert out.shape == ref.shape, (out.shape, ref.shape)
    max_err = float(jnp.max(jnp.abs(out - ref)))
    mean_err = float(jnp.mean(jnp.abs(out - ref)))
    # bf16 MXU operands -> loosened tolerance vs the pure-f32 reference.
    assert max_err < 1e-1 and mean_err < 1e-2, (max_err, mean_err)
    return out.shape


if __name__ == "__main__":
    key = jax.random.PRNGKey(0)
    k1, k2 = jax.random.split(key)

    # Down-sampling DBlock (stride 2) — the common discriminator block.
    shape1 = _check(k1, N=2, C_in=4, H=16, W=16, C_out=8, stride=2)
    assert shape1 == (2, 8, 8, 8), shape1

    # Stride-1 DBlock (e.g. the deeper / final discriminator stages).
    shape2 = _check(k2, N=2, C_in=8, H=16, W=16, C_out=16, stride=1)
    assert shape2 == (2, 16, 15, 15), shape2

    print("KERNEL_OK")
</pallas_src>

<mosaic_0001>
module attributes {stable_mosaic.version = 11 : i64} {
  func.func @kernel(%arg0: i32, %arg1: i32, %arg2: i32, %arg3: memref<1x128xf32, #tpu.memory_space<vmem>>, %arg4: memref<1x4x8x256xbf16, #tpu.memory_space<vmem>>, %arg5: memref<8x128xbf16, #tpu.memory_space<vmem>>, %arg6: memref<1x8x128xf32, #tpu.memory_space<vmem>>, %arg7: memref<8x128xf32, #tpu.memory_space<vmem>>) attributes {dimension_semantics = [#tpu.dimension_semantics<parallel>, #tpu.dimension_semantics<parallel>, #tpu.dimension_semantics<arbitrary>], iteration_bounds = array<i64: 2, 1, 1>, scalar_prefetch = 0 : i64, scratch_operands = 1 : i64, tpu.core_type = #tpu.core_type<tc>, window_params = [{pipeline_mode = #tpu.pipeline_mode<synchronous>, transform_indices = @transform_0, window_bounds = array<i64: 1, 128>}, {transform_indices = @transform_1, window_bounds = array<i64: 1, 4, 8, 256>}, {transform_indices = @transform_2, window_bounds = array<i64: 8, 128>}, {transform_indices = @transform_3, window_bounds = array<i64: 1, 8, 128>}]} {
    %c0 = arith.constant 0 : index
    %c0_0 = arith.constant 0 : index
    %0 = vector.load %arg5[%c0, %c0_0] : memref<8x128xbf16, #tpu.memory_space<vmem>>, vector<8x128xbf16>
    %c0_1 = arith.constant 0 : index
    %c0_2 = arith.constant 0 : index
    %c0_3 = arith.constant 0 : index
    %c0_4 = arith.constant 0 : index
    %1 = vector.load %arg4[%c0_1, %c0_2, %c0_3, %c0_4] : memref<1x4x8x256xbf16, #tpu.memory_space<vmem>>, vector<1x1x8x128xbf16>
    %2 = vector.shape_cast %1 : vector<1x1x8x128xbf16> to vector<8x128xbf16>
    %c0_5 = arith.constant 0 : index
    %c1 = arith.constant 1 : index
    %c0_6 = arith.constant 0 : index
    %c0_7 = arith.constant 0 : index
    %3 = vector.load %arg4[%c0_5, %c1, %c0_6, %c0_7] : memref<1x4x8x256xbf16, #tpu.memory_space<vmem>>, vector<1x1x8x128xbf16>
    %4 = vector.shape_cast %3 : vector<1x1x8x128xbf16> to vector<8x128xbf16>
    %c0_8 = arith.constant 0 : index
    %c0_9 = arith.constant 0 : index
    %c0_10 = arith.constant 0 : index
    %c1_11 = arith.constant 1 : index
    %5 = vector.load %arg4[%c0_8, %c0_9, %c0_10, %c1_11] : memref<1x4x8x256xbf16, #tpu.memory_space<vmem>>, vector<1x1x8x128xbf16>
    %6 = vector.shape_cast %5 : vector<1x1x8x128xbf16> to vector<8x128xbf16>
    %c0_12 = arith.constant 0 : index
    %c1_13 = arith.constant 1 : index
    %c0_14 = arith.constant 0 : index
    %c1_15 = arith.constant 1 : index
    %7 = vector.load %arg4[%c0_12, %c1_13, %c0_14, %c1_15] : memref<1x4x8x256xbf16, #tpu.memory_space<vmem>>, vector<1x1x8x128xbf16>
    %8 = vector.shape_cast %7 : vector<1x1x8x128xbf16> to vector<8x128xbf16>
    %c0_16 = arith.constant 0 : index
    %c2 = arith.constant 2 : index
    %c0_17 = arith.constant 0 : index
    %c0_18 = arith.constant 0 : index
    %9 = vector.load %arg4[%c0_16, %c2, %c0_17, %c0_18] : memref<1x4x8x256xbf16, #tpu.memory_space<vmem>>, vector<1x1x8x128xbf16>
    %10 = vector.shape_cast %9 : vector<1x1x8x128xbf16> to vector<8x128xbf16>
    %c0_19 = arith.constant 0 : index
    %c3 = arith.constant 3 : index
    %c0_20 = arith.constant 0 : index
    %c0_21 = arith.constant 0 : index
    %11 = vector.load %arg4[%c0_19, %c3, %c0_20, %c0_21] : memref<1x4x8x256xbf16, #tpu.memory_space<vmem>>, vector<1x1x8x128xbf16>
    %12 = vector.shape_cast %11 : vector<1x1x8x128xbf16> to vector<8x128xbf16>
    %c0_22 = arith.constant 0 : index
    %c2_23 = arith.constant 2 : index
    %c0_24 = arith.constant 0 : index
    %c1_25 = arith.constant 1 : index
    %13 = vector.load %arg4[%c0_22, %c2_23, %c0_24, %c1_25] : memref<1x4x8x256xbf16, #tpu.memory_space<vmem>>, vector<1x1x8x128xbf16>
    %14 = vector.shape_cast %13 : vector<1x1x8x128xbf16> to vector<8x128xbf16>
    %c0_26 = arith.constant 0 : index
    %c3_27 = arith.constant 3 : index
    %c0_28 = arith.constant 0 : index
    %c1_29 = arith.constant 1 : index
    %15 = vector.load %arg4[%c0_26, %c3_27, %c0_28, %c1_29] : memref<1x4x8x256xbf16, #tpu.memory_space<vmem>>, vector<1x1x8x128xbf16>
    %16 = vector.shape_cast %15 : vector<1x1x8x128xbf16> to vector<8x128xbf16>
    %c0_30 = arith.constant 0 : index
    %c0_31 = arith.constant 0 : index
    %c0_32 = arith.constant 0 : index
    %c9 = arith.constant 9 : index
    %17 = vector.load %arg4[%c0_30, %c0_31, %c0_32, %c9] : memref<1x4x8x256xbf16, #tpu.memory_space<vmem>>, vector<1x1x8x128xbf16>
    %18 = vector.shape_cast %17 : vector<1x1x8x128xbf16> to vector<8x128xbf16>
    %c0_33 = arith.constant 0 : index
    %c1_34 = arith.constant 1 : index
    %c0_35 = arith.constant 0 : index
    %c9_36 = arith.constant 9 : index
    %19 = vector.load %arg4[%c0_33, %c1_34, %c0_35, %c9_36] : memref<1x4x8x256xbf16, #tpu.memory_space<vmem>>, vector<1x1x8x128xbf16>
    %20 = vector.shape_cast %19 : vector<1x1x8x128xbf16> to vector<8x128xbf16>
    %c0_37 = arith.constant 0 : index
    %c0_38 = arith.constant 0 : index
    %c0_39 = arith.constant 0 : index
    %c10 = arith.constant 10 : index
    %21 = vector.load %arg4[%c0_37, %c0_38, %c0_39, %c10] : memref<1x4x8x256xbf16, #tpu.memory_space<vmem>>, vector<1x1x8x128xbf16>
    %22 = vector.shape_cast %21 : vector<1x1x8x128xbf16> to vector<8x128xbf16>
    %c0_40 = arith.constant 0 : index
    %c1_41 = arith.constant 1 : index
    %c0_42 = arith.constant 0 : index
    %c10_43 = arith.constant 10 : index
    %23 = vector.load %arg4[%c0_40, %c1_41, %c0_42, %c10_43] : memref<1x4x8x256xbf16, #tpu.memory_space<vmem>>, vector<1x1x8x128xbf16>
    %24 = vector.shape_cast %23 : vector<1x1x8x128xbf16> to vector<8x128xbf16>
    %c0_44 = arith.constant 0 : index
    %c2_45 = arith.constant 2 : index
    %c0_46 = arith.constant 0 : index
    %c9_47 = arith.constant 9 : index
    %25 = vector.load %arg4[%c0_44, %c2_45, %c0_46, %c9_47] : memref<1x4x8x256xbf16, #tpu.memory_space<vmem>>, vector<1x1x8x128xbf16>
    %26 = vector.shape_cast %25 : vector<1x1x8x128xbf16> to vector<8x128xbf16>
    %c0_48 = arith.constant 0 : index
    %c3_49 = arith.constant 3 : index
    %c0_50 = arith.constant 0 : index
    %c9_51 = arith.constant 9 : index
    %27 = vector.load %arg4[%c0_48, %c3_49, %c0_50, %c9_51] : memref<1x4x8x256xbf16, #tpu.memory_space<vmem>>, vector<1x1x8x128xbf16>
    %28 = vector.shape_cast %27 : vector<1x1x8x128xbf16> to vector<8x128xbf16>
    %c0_52 = arith.constant 0 : index
    %c2_53 = arith.constant 2 : index
    %c0_54 = arith.constant 0 : index
    %c10_55 = arith.constant 10 : index
    %29 = vector.load %arg4[%c0_52, %c2_53, %c0_54, %c10_55] : memref<1x4x8x256xbf16, #tpu.memory_space<vmem>>, vector<1x1x8x128xbf16>
    %30 = vector.shape_cast %29 : vector<1x1x8x128xbf16> to vector<8x128xbf16>
    %c0_56 = arith.constant 0 : index
    %c3_57 = arith.constant 3 : index
    %c0_58 = arith.constant 0 : index
    %c10_59 = arith.constant 10 : index
    %31 = vector.load %arg4[%c0_56, %c3_57, %c0_58, %c10_59] : memref<1x4x8x256xbf16, #tpu.memory_space<vmem>>, vector<1x1x8x128xbf16>
    %32 = vector.shape_cast %31 : vector<1x1x8x128xbf16> to vector<8x128xbf16>
    %33 = tpu.concatenate %2, %4, %6, %8, %10, %12, %14, %16, %18, %20, %22, %24, %26, %28, %30, %32 in 0 : vector<8x128xbf16>, vector<8x128xbf16>, vector<8x128xbf16>, vector<8x128xbf16>, vector<8x128xbf16>, vector<8x128xbf16>, vector<8x128xbf16>, vector<8x128xbf16>, vector<8x128xbf16>, vector<8x128xbf16>, vector<8x128xbf16>, vector<8x128xbf16>, vector<8x128xbf16>, vector<8x128xbf16>, vector<8x128xbf16>, vector<8x128xbf16> -> vector<128x128xbf16>
    %cst = arith.constant dense<0.000000e+00> : vector<8x128xf32>
    %34 = tpu.matmul %0, %33, %cst {dimension_numbers = #tpu.dot_dimension_numbers<[1], [0], [0], [1], [0, 0, 1, 1], [], []>} : vector<8x128xbf16>, vector<128x128xbf16>, vector<8x128xf32> -> vector<8x128xf32>
    %c0_i32 = arith.constant 0 : i32
    %35 = arith.cmpi eq, %arg2, %c0_i32 : i32
    %36 = arith.extui %35 : i1 to i32
    %c0_i32_60 = arith.constant 0 : i32
    %37 = arith.cmpi ne, %36, %c0_i32_60 : i32
    scf.if %37 {
      %c0_65 = arith.constant 0 : index
      %c0_66 = arith.constant 0 : index
      %44 = vector.load %arg7[%c0_65, %c0_66] : memref<8x128xf32, #tpu.memory_space<vmem>>, vector<8x128xf32>
      tpu.vector_store %arg7[%c0_65, %c0_66], %34 {strides = array<i32>} : memref<8x128xf32, #tpu.memory_space<vmem>>, vector<8x128xf32>,
    } else {
    }
    %c0_i32_61 = arith.constant 0 : i32
    %38 = arith.cmpi sgt, %arg2, %c0_i32_61 : i32
    %39 = arith.extui %38 : i1 to i32
    %c0_i32_62 = arith.constant 0 : i32
    %40 = arith.cmpi ne, %39, %c0_i32_62 : i32
    scf.if %40 {
      %c0_65 = arith.constant 0 : index
      %c0_66 = arith.constant 0 : index
      %44 = vector.load %arg7[%c0_65, %c0_66] : memref<8x128xf32, #tpu.memory_space<vmem>>, vector<8x128xf32>
      %45 = arith.addf %44, %34 : vector<8x128xf32>
      %c0_67 = arith.constant 0 : index
      %c0_68 = arith.constant 0 : index
      %46 = vector.load %arg7[%c0_67, %c0_68] : memref<8x128xf32, #tpu.memory_space<vmem>>, vector<8x128xf32>
      tpu.vector_store %arg7[%c0_67, %c0_68], %45 {strides = array<i32>} : memref<8x128xf32, #tpu.memory_space<vmem>>, vector<8x128xf32>,
    } else {
    }
    %c0_i32_63 = arith.constant 0 : i32
    %41 = arith.cmpi eq, %arg2, %c0_i32_63 : i32
    %42 = arith.extui %41 : i1 to i32
    %c0_i32_64 = arith.constant 0 : i32
    %43 = arith.cmpi ne, %42, %c0_i32_64 : i32
    scf.if %43 {
      %c0_65 = arith.constant 0 : index
      %c0_66 = arith.constant 0 : index
      %44 = vector.load %arg7[%c0_65, %c0_66] : memref<8x128xf32, #tpu.memory_space<vmem>>, vector<8x128xf32>
      %c0_67 = arith.constant 0 : index
      %c0_68 = arith.constant 0 : index
      %45 = vector.load %arg3[%c0_67, %c0_68] : memref<1x128xf32, #tpu.memory_space<vmem>>, vector<1x128xf32>
      %46 = vector.broadcast %45 : vector<1x128xf32> to vector<8x128xf32>
      %47 = arith.mulf %44, %46 : vector<8x128xf32>
      %cst_69 = arith.constant dense<0.000000e+00> : vector<8xf32>
      %48 = vector.multi_reduction <add>, %47, %cst_69 [1] : vector<8x128xf32> to vector<8xf32>
      %49 = vector.shape_cast %48 : vector<8xf32> to vector<8x1xf32>
      %50 = arith.mulf %47, %44 : vector<8x128xf32>
      %cst_70 = arith.constant dense<0.000000e+00> : vector<8xf32>
      %51 = vector.multi_reduction <add>, %50, %cst_70 [1] : vector<8x128xf32> to vector<8xf32>
      %52 = vector.shape_cast %51 : vector<8xf32> to vector<8x1xf32>
      %cst_71 = arith.constant 1.562500e-02 : f32
      %53 = vector.broadcast %cst_71 : f32 to vector<8x1xf32>
      %54 = arith.mulf %49, %53 : vector<8x1xf32>
      %cst_72 = arith.constant 1.562500e-02 : f32
      %55 = vector.broadcast %cst_72 : f32 to vector<8x1xf32>
      %56 = arith.mulf %52, %55 : vector<8x1xf32>
      %57 = arith.mulf %54, %54 : vector<8x1xf32>
      %58 = arith.subf %56, %57 : vector<8x1xf32>
      %cst_73 = arith.constant 0.000000e+00 : f32
      %59 = vector.broadcast %cst_73 : f32 to vector<8x1xf32>
      %60 = arith.maximumf %58, %59 : vector<8x1xf32>
      %61 = vector.broadcast %54 : vector<8x1xf32> to vector<8x128xf32>
      %62 = arith.subf %44, %61 : vector<8x128xf32>
      %cst_74 = arith.constant 9.99999974E-6 : f32
      %63 = vector.broadcast %cst_74 : f32 to vector<8x1xf32>
      %64 = arith.addf %60, %63 : vector<8x1xf32>
      %65 = math.rsqrt %64 : vector<8x1xf32>
      %66 = vector.broadcast %65 : vector<8x1xf32> to vector<8x128xf32>
      %67 = arith.mulf %62, %66 : vector<8x128xf32>
      %cst_75 = arith.constant 0.000000e+00 : f32
      %68 = vector.broadcast %cst_75 : f32 to vector<8x128xf32>
      %69 = arith.cmpf oge, %67, %68 : vector<8x128xf32>
      %cst_76 = arith.constant 2.000000e-01 : f32
      %70 = vector.broadcast %cst_76 : f32 to vector<8x128xf32>
      %71 = arith.mulf %70, %67 : vector<8x128xf32>
      %72 = arith.select %69, %67, %71 : vector<8x128xi1>, vector<8x128xf32>
      %c0_77 = arith.constant 0 : index
      %c0_78 = arith.constant 0 : index
      %c0_79 = arith.constant 0 : index
      %73 = vector.load %arg6[%c0_77, %c0_78, %c0_79] : memref<1x8x128xf32, #tpu.memory_space<vmem>>, vector<1x8x128xf32>
      %74 = vector.shape_cast %73 : vector<1x8x128xf32> to vector<8x128xf32>
      %75 = vector.shape_cast %72 : vector<8x128xf32> to vector<1x8x128xf32>
      tpu.vector_store %arg6[%c0_77, %c0_78, %c0_79], %75 {strides = array<i32>} : memref<1x8x128xf32, #tpu.memory_space<vmem>>, vector<1x8x128xf32>,
    } else {
    }
    return
  }
  func.func @transform_0(%arg0: i32, %arg1: i32, %arg2: i32) -> (i32, i32) {
    %c0_i32 = arith.constant 0 : i32
    %c0_i32_0 = arith.constant 0 : i32
    %c0_i32_1 = arith.constant 0 : i32
    return %c0_i32, %c0_i32_0 : i32, i32
  }
  func.func @transform_1(%arg0: i32, %arg1: i32, %arg2: i32) -> (i32, i32, i32, i32) {
    %c0_i32 = arith.constant 0 : i32
    %c0_i32_0 = arith.constant 0 : i32
    %c0_i32_1 = arith.constant 0 : i32
    return %arg0, %c0_i32, %arg2, %c0_i32_0 : i32, i32, i32, i32
  }
  func.func @transform_2(%arg0: i32, %arg1: i32, %arg2: i32) -> (i32, i32) {
    %c0_i32 = arith.constant 0 : i32
    %c0_i32_0 = arith.constant 0 : i32
    return %arg1, %c0_i32 : i32, i32
  }
  func.func @transform_3(%arg0: i32, %arg1: i32, %arg2: i32) -> (i32, i32, i32) {
    %c0_i32 = arith.constant 0 : i32
    %c0_i32_0 = arith.constant 0 : i32
    return %arg0, %arg1, %c0_i32 : i32, i32, i32
  }
}

</mosaic_0001>

<bundles_post_ra>
// kernel: dblock_forward.1
= control target key start
LH: loop header
LB: loop body
LE: loop exit
PB: predicated region body
PF: predicated region fallthrough
CT: control target
= control target key end

     0   :  { %s691_s12 = smov 0   ;;  %s693_s13 = smov 0   ;;  %s773_s0 = inlined_call_operand.vmem [shape: f32[1,128], index: 0, kind: input, shape index: {}]   ;;  %s774_s1 = inlined_call_operand.vmem [shape: bf16[2,4,8,256], index: 1, kind: input, shape index: {}]   ;;  %s775_s2 = inlined_call_operand.vmem [shape: bf16[8,128], index: 2, kind: input, shape index: {}]   ;;  %s776_s3 = inlined_call_operand.vmem [shape: f32[2,8,128], index: 3, kind: output, shape index: {}]  }
   0x1   :  { %s695_s14 = smov 0  }
   0x2 LB: > { %s32_s15 = sadd.s32 1, %s660_s13  ;;  %p548_p0 = scmp.ge.s32.totalorder %s664_s14, 1  ;;  %s664_s14 = sphi %s695_s14, %s13_s14   ;;  %s660_s13 = sphi %s693_s13, %s778_s13   ;;  %s656_s12 = sphi %s691_s12, %s777_s12  }
   0x3   : > { %p34_p1 = scmp.ge.s32.totalorder %s32_s15, 2  ;;  %p173_p2 = scmp.lt.s32.totalorder %s664_s14, 3 }
   0x5   : > { %s780_s15 = smov (%p34_p1, %s32_s15), 0  ;;  %p174_p3 = pnand %p548_p0, %p173_p2 }
   0x6   : > { %p207_p4 = scmp.lt.s32.totalorder (!%p174_p3), %s656_s12, 1  ;;  %v666_v0 = vmov (!%p174_p3), 0.0   ;;  %vm329_vm0 = vcmask (!%p174_p3), 1043456   ;;  %s667_s20 = smov (!%p174_p3), 127   ;;  %vm670_vm1 = vmmov (!%p174_p3), 0   ;;  %vm252_vm2 = vcmask (!%p174_p3), 1039360  }
   0x7   : > { %177 = sbr.rel (%p174_p3) target bundleno = 567 (0x237), region = 32  ;;  %581 = vmatprep.subr.bf16.mxu0 (!%p174_p3), %v666_v0  ;;  %s668_s21 = smov (!%p174_p3), 119   ;;  %597 = vmatprep.mubr.msk.bf16.mxu0 (!%p174_p3), %vm670_vm1, %v666_v0  ;;  %vm291_vm3 = vcmask (!%p174_p3), 973824   ;;  %vm302_vm4 = vcmask (!%p174_p3), 965632   ;;  %v228_v61 = vld [vmem:[%s775_s2] sm:$0xf] (!%p174_p3) }
   0x8   : > { %s669_s22 = smov (!%p174_p3), 118   ;;  %v568_v62 = vld [vmem:[%s773_s0] ss:$0 sm:$0xff] (!%p174_p3) }
   0xe   : > { %s782_s12 = smov (!%p207_p4, %s656_s12), 1 }
   0xf   : > { %s571_s16 = sshll.u32 %s782_s12, 5  ;;  %s551_s27 = sshll.u32 %s782_s12, 3 }
  0x10   : > { %s716_s19 = scalar_lea.vmem %s774_s1, %s571_s16  ;;  %s226_s30 = scalar_lea.vmem %s776_s3, %s551_s27 }
  0x11   : > { %v553_v1 = vld [vmem:[%s716_s19 + $0x8] sm:$0xff]  ;;  %v232_v2 = vld [vmem:[%s716_s19] sm:$0xff]  ;;  %v556_v9 = vld [vmem:[%s716_s19 + $0x10] sm:$0xff] }
  0x12   : > { %v561_v3 = vcombine.low %v553_v1, %v553_v1  ;;  %v559_v4 = vcombine.low %v232_v2, %v232_v2  ;;  %v229_v5 = vld [vmem:[%s716_s19] sm:$0xf]  ;;  %v638_v6 = vld [vmem:[%s716_s19 + $0x8] ss:$0 sps:$4 sm:$0xff]   ;;  %v562_v7 = vcombine.high %v553_v1, %v553_v1  ;;  %v560_v8 = vcombine.high %v232_v2, %v232_v2  ;;  %v557_v13 = vld [vmem:[%s716_s19 + $0x18] sm:$0xff] }
  0x13   : > { %v332_v10 = vsel %vm329_vm0, %v229_v5, %v638_v6  ;;  %v565_v11 = vcombine.high %v556_v9, %v556_v9  ;;  %v564_v12 = vcombine.low %v556_v9, %v556_v9  ;;  %v567_v14 = vcombine.high %v557_v13, %v557_v13  ;;  %v639_v20 = vld [vmem:[%s716_s19 + $0x18] ss:$0 sps:$4 sm:$0xff]   ;;  %v554_v23 = vld [vmem:[%s716_s19 + $0x10] sm:$0xf] }
  0x14   : > { %259 = vrot.lane.b32.xlu1 %v561_v3, %s667_s20  ;;  %248 = vrot.lane.b32.xlu0 %v559_v4, %s667_s20  ;;  %v566_v15 = vcombine.low %v557_v13, %v557_v13  ;;  %v340_v27 = vsel %vm329_vm0, %v554_v23, %v639_v20 }
  0x15   : > { %582 = vmatpush3.bf16.msra.mxu0 %v332_v10 }
  0x16   : > { %583 = vmatprep.subr.bf16.mxu0 %v666_v0 }
  0x18   : > { %261 = vrot.lane.b32.xlu1 %v562_v7, %s667_s20  ;;  %250 = vrot.lane.b32.xlu0 %v560_v8, %s667_s20 }
  0x1c   : > { %274 = vrot.lane.b32.xlu1 %v565_v11, %s667_s20  ;;  %272 = vrot.lane.b32.xlu0 %v564_v12, %s667_s20 }
  0x20   : > { %284 = vrot.lane.b32.xlu1 %v567_v14, %s667_s20  ;;  %282 = vrot.lane.b32.xlu0 %v566_v15, %s667_s20 }
  0x24   : > { %289 = vrot.lane.b32.xlu1 %v560_v8, %s668_s21  ;;  %287 = vrot.lane.b32.xlu0 %v559_v4, %s668_s21 }
  0x28   : > { %295 = vrot.lane.b32.xlu1 %v562_v7, %s668_s21  ;;  %293 = vrot.lane.b32.xlu0 %v561_v3, %s668_s21 }
  0x2c   : > { %300 = vrot.lane.b32.xlu1 %v560_v8, %s669_s22  ;;  %298 = vrot.lane.b32.xlu0 %v559_v4, %s669_s22 }
  0x30   : > { %306 = vrot.lane.b32.xlu1 %v562_v7, %s669_s22  ;;  %304 = vrot.lane.b32.xlu0 %v561_v3, %s669_s22 }
  0x34   : > { %311 = vrot.lane.b32.xlu1 %v565_v11, %s668_s21  ;;  %309 = vrot.lane.b32.xlu0 %v564_v12, %s668_s21 }
  0x38   : > { %316 = vrot.lane.b32.xlu1 %v567_v14, %s668_s21  ;;  %314 = vrot.lane.b32.xlu0 %v566_v15, %s668_s21 }
  0x3c   : > { %321 = vrot.lane.b32.xlu1 %v565_v11, %s669_s22  ;;  %319 = vrot.lane.b32.xlu0 %v564_v12, %s669_s22 }
  0x40   : > { %326 = vrot.lane.b32.xlu1 %v567_v14, %s669_s22  ;;  %324 = vrot.lane.b32.xlu0 %v566_v15, %s669_s22 }
  0x86   : > { %v260_v16 = vpop.permute.xlu1 %259  ;;  %v249_v17 = vpop.permute.xlu0 %248 }
  0x8a   : > { %v262_v18 = vpop.permute.xlu1 %261  ;;  %v251_v19 = vpop.permute.xlu0 %250 }
  0x8b   : > { %v263_v21 = vsel %vm252_vm2, %v260_v16, %v262_v18  ;;  %v253_v22 = vsel %vm252_vm2, %v249_v17, %v251_v19 }
  0x8c   : > { %v336_v24 = vsel %vm329_vm0, %v253_v22, %v263_v21 }
  0x8d   : > { %584 = vmatpush3.bf16.msra.mxu0 %v336_v24 }
  0x8e   : > { %v275_v25 = vpop.permute.xlu1 %274  ;;  %v273_v26 = vpop.permute.xlu0 %272  ;;  %585 = vmatprep.subr.bf16.mxu0 %v666_v0 }
  0x8f   : > { %v276_v30 = vsel %vm252_vm2, %v273_v26, %v275_v25 }
  0x91   : > { %586 = vmatpush3.bf16.msra.mxu0 %v340_v27 }
  0x92   : > { %v285_v28 = vpop.permute.xlu1 %284  ;;  %v283_v29 = vpop.permute.xlu0 %282  ;;  %587 = vmatprep.subr.bf16.mxu0 %v666_v0 }
  0x93   : > { %v286_v31 = vsel %vm252_vm2, %v283_v29, %v285_v28 }
  0x94   : > { %v344_v32 = vsel %vm329_vm0, %v276_v30, %v286_v31 }
  0x95   : > { %588 = vmatpush3.bf16.msra.mxu0 %v344_v32 }
  0x96   : > { %v290_v33 = vpop.permute.xlu1 %289  ;;  %v288_v34 = vpop.permute.xlu0 %287  ;;  %589 = vmatprep.subr.bf16.mxu0 %v666_v0 }
  0x97   : > { %v292_v37 = vsel %vm291_vm3, %v288_v34, %v290_v33 }
  0x9a   : > { %v296_v35 = vpop.permute.xlu1 %295  ;;  %v294_v36 = vpop.permute.xlu0 %293 }
  0x9b   : > { %v297_v38 = vsel %vm291_vm3, %v294_v36, %v296_v35 }
  0x9c   : > { %v348_v39 = vsel %vm329_vm0, %v292_v37, %v297_v38 }
  0x9d   : > { %590 = vmatpush3.bf16.msra.mxu0 %v348_v39 }
  0x9e   : > { %v301_v40 = vpop.permute.xlu1 %300  ;;  %v299_v41 = vpop.permute.xlu0 %298  ;;  %591 = vmatprep.subr.bf16.mxu0 %v666_v0 }
  0x9f   : > { %v303_v44 = vsel %vm302_vm4, %v299_v41, %v301_v40 }
  0xa2   : > { %v307_v42 = vpop.permute.xlu1 %306  ;;  %v305_v43 = vpop.permute.xlu0 %304 }
  0xa3   : > { %v308_v45 = vsel %vm302_vm4, %v305_v43, %v307_v42 }
  0xa4   : > { %v352_v46 = vsel %vm329_vm0, %v303_v44, %v308_v45 }
  0xa5   : > { %592 = vmatpush3.bf16.msra.mxu0 %v352_v46 }
  0xa6   : > { %v312_v47 = vpop.permute.xlu1 %311  ;;  %v310_v48 = vpop.permute.xlu0 %309  ;;  %593 = vmatprep.subr.bf16.mxu0 %v666_v0 }
  0xa7   : > { %v313_v51 = vsel %vm291_vm3, %v310_v48, %v312_v47 }
  0xaa   : > { %v317_v49 = vpop.permute.xlu1 %316  ;;  %v315_v50 = vpop.permute.xlu0 %314 }
  0xab   : > { %v318_v52 = vsel %vm291_vm3, %v315_v50, %v317_v49 }
  0xac   : > { %v356_v53 = vsel %vm329_vm0, %v313_v51, %v318_v52 }
  0xad   : > { %594 = vmatpush3.bf16.msra.mxu0 %v356_v53 }
  0xae   : > { %v322_v54 = vpop.permute.xlu1 %321  ;;  %v320_v55 = vpop.permute.xlu0 %319  ;;  %595 = vmatprep.subr.bf16.mxu0 %v666_v0 }
  0xaf   : > { %v323_v58 = vsel %vm302_vm4, %v320_v55, %v322_v54 }
  0xb2   : > { %v327_v56 = vpop.permute.xlu1 %326  ;;  %v325_v57 = vpop.permute.xlu0 %324 }
  0xb3   : > { %v328_v59 = vsel %vm302_vm4, %v325_v57, %v327_v56 }
  0xb4   : > { %v360_v60 = vsel %vm329_vm0, %v323_v58, %v328_v59 }
  0xb5   : > { %596 = vmatpush3.bf16.msra.mxu0 %v360_v60 }
  0xb8   : > { %598 = vmatmul.mubr.bf16.vlgmr.msra.gmra.mrb[0].mxu0 %v228_v61 }
 0x18b   : > { %v396_v63 = vpop.f32.mrb[0].mxu0 }
 0x18c   : > { %v599_v0 = vpop.f32.mrb[1].mxu0  ;;  %v425_v1 = vmul.f32 %v568_v62, %v396_v63 }
 0x18d   : > { %v399_v2 = vpop.f32.mrb[2].mxu0 }
 0x18e   : > { %426 = vadd.xlane.f32.xlu0 %v425_v1  ;;  %v600_v3 = vpop.f32.mrb[3].mxu0  ;;  %v428_v4 = vmul.f32 %v425_v1, %v396_v63 }
 0x190   : > { %429 = vadd.xlane.f32.xlu1 %v428_v4 }
 0x21b   : > { %v427_v5 = vpop.xlane.xlu0 %426 }
 0x21c   : > { %v431_v6 = vmul.f32 0.015625, %v427_v5 }
 0x21d   : > { %v430_v7 = vpop.xlane.xlu1 %429 }
 0x21e   : > { %v433_v8 = vmul.f32 %v431_v6, %v431_v6  ;;  %v432_v9 = vmul.f32 0.015625, %v430_v7  ;;  %v436_v13 = vsub.f32 %v396_v63, %v431_v6 }
 0x220   : > { %v434_v10 = vsub.f32 %v432_v9, %v433_v8 }
 0x222   : > { %v435_v11 = vmax.f32 %v434_v10, 0.0 }
 0x224   : > { %v437_v12 = vadd.f32 1e-05, %v435_v11 }
 0x226   : > { %640 = vrsqrt.f32 %v437_v12 }
 0x230   : > { %v641_v14 = vpop.eup %640 }
 0x231   : > { %v439_v15 = vmul.f32 %v641_v14, %v436_v13 }
 0x233   : > { %vm440_vm5 = vcmp.ge.f32.partialorder %v439_v15, 0.0  ;;  %v441_v16 = vmul.f32 0.2, %v439_v15 }
 0x235   : > { %v442_v17 = vsel %vm440_vm5, %v439_v15, %v441_v16 }
 0x236   : > { %443 = vst [vmem:[%s226_s30] sm:$0xff] %v442_v17 }
 0x237 PF: > { %s13_s14 = sadd.s32 1, %s664_s14   ;;  %s777_s12 = smov %s660_s13 }
 0x238   : > { %p10_p5 = scmp.ge.s32.totalorder %s13_s14, 4   ;;  %s778_s13 = smov %s780_s15 }
 0x23a   :  { %12 = sbr.rel (!%p10_p5) target bundleno = 2 (0x2), region = 80 }

</bundles_post_ra>
